<compile_context>
chip_gen: v7x
topology: tpu7x:2x2x1
jax: 0.10.0
libtpu: 0.0.40
codegen_flags: <defaults>
</compile_context>

<pallas_src>
import functools

import jax
import jax.numpy as jnp
import numpy as np
from jax.experimental import pallas as pl
from jax.experimental.pallas import tpu as pltpu


def _round_up(a, b):
    return (a + b - 1) // b * b


def _mxu_supports_int8():
    """v4/v5/v6 MXUs have a native int8 path; v7x (and fallback) use bf16."""
    try:
        kind = jax.devices()[0].device_kind.lower().replace(" ", "")
    except Exception:
        return False
    return any(t in kind for t in ("v4", "v5", "v6"))


# ----------------------------------------------------------------------------
# Fused kernel: quantize-activation tile + quantized matmul (K-reduction with
# int32 accumulator) + folded dequant epilogue.
# ----------------------------------------------------------------------------
def _qlinear_kernel(qmin, qmax, use_int8_dot,
                    inv_scale_ref, zp_ref,              # SMEM scalars (1,) f32
                    x_ref, w_ref, scale_ref, off_ref,   # VMEM tiles
                    o_ref,                              # VMEM output tile
                    acc_ref):                           # VMEM scratch, int32
    k = pl.program_id(2)

    @pl.when(k == 0)
    def _init():
        acc_ref[...] = jnp.zeros_like(acc_ref)

    inv_s = inv_scale_ref[0]          # 1 / x_scale  (precomputed reciprocal)
    zp = zp_ref[0]                    # integer-valued f32 zero point

    # dynamic per-tensor affine quantization of the activation tile:
    #   x_q = clamp(round(x * (1/scale)) + zp, qmin, qmax)
    xq = jnp.clip(jnp.round(x_ref[...] * inv_s) + zp, qmin, qmax)

    if use_int8_dot:
        # Native int8 x int8 -> int32 MXU path; exact for any K.
        x_i8 = xq.astype(jnp.int32).astype(jnp.int8)
        acc_ref[...] += jnp.dot(x_i8, w_ref[...],
                                preferred_element_type=jnp.int32)
    else:
        # bf16 MXU path (v7x has no integer MXU). int8-range values are exact
        # in bf16 and per-chunk f32 accumulation is exact while tk <= 512, so
        # casting each chunk back to int32 keeps the reduction integer-exact.
        part = jnp.dot(xq.astype(jnp.bfloat16),
                       w_ref[...].astype(jnp.bfloat16),
                       preferred_element_type=jnp.float32)
        acc_ref[...] += part.astype(jnp.int32)

    @pl.when(k == pl.num_programs(2) - 1)
    def _finish():
        # Folded dequant: y = acc*(sx*sw) + (bias - zp*w_sums*sx*sw)
        o_ref[...] = (acc_ref[...].astype(jnp.float32) * scale_ref[...]
                      + off_ref[...]).astype(o_ref.dtype)


def dynamically_quantized_linear(x, w_int8_t, w_int8_t_sums, w_scales, bias=None,
                                 x_quant_min=-128, x_quant_max=127,
                                 use_int8_mxu=None):
    """Forward of DynamicallyQuantizedLinear. Returns float32 [M, N]."""
    M, K = x.shape
    Kw, N = w_int8_t.shape
    assert K == Kw, "in_features mismatch"

    if use_int8_mxu is None:
        use_int8_mxu = _mxu_supports_int8()

    # --- per-tensor activation quant params (plain-JAX fused reduce over x) ---
    mn = jnp.minimum(jnp.min(x), 0.0).astype(jnp.float32)
    mx = jnp.maximum(jnp.max(x), 0.0).astype(jnp.float32)
    eps = jnp.finfo(jnp.float32).eps
    x_scale = jnp.maximum((mx - mn) / float(x_quant_max - x_quant_min), eps)
    x_zp = jnp.clip(float(x_quant_min) - jnp.round(mn / x_scale),
                    float(x_quant_min), float(x_quant_max))   # integer-valued f32
    inv_scale = (1.0 / x_scale).astype(jnp.float32)

    # --- folded dequant epilogue constants (constant across all M tiles) ---
    w_scales_f = w_scales.astype(jnp.float32).reshape(1, N)
    w_sums_f = w_int8_t_sums.astype(jnp.float32).reshape(1, N)
    scale_row = (x_scale * w_scales_f).astype(jnp.float32)            # (1, N)
    bias_row = (jnp.zeros((1, N), jnp.float32) if bias is None
                else bias.astype(jnp.float32).reshape(1, N))
    off_row = (bias_row - x_zp * w_sums_f * scale_row).astype(jnp.float32)

    # --- tile sizes (MXU-sized where the problem allows) ---
    tm = min(256, _round_up(M, 8))
    tn = min(256, _round_up(N, 128))
    tk = min(512, _round_up(K, 128))
    Mp, Np, Kp = _round_up(M, tm), _round_up(N, tn), _round_up(K, tk)

    # Zero padding is exact: padded x columns quantize to zp but hit zero weight
    # rows (0 contribution), padded N columns get zero scale/offset, padded M
    # rows are sliced off below.
    x_p = jnp.pad(x.astype(jnp.float32), ((0, Mp - M), (0, Kp - K)))
    w_p = jnp.pad(w_int8_t, ((0, Kp - K), (0, Np - N)))
    scale_p = jnp.pad(scale_row, ((0, 0), (0, Np - N)))
    off_p = jnp.pad(off_row, ((0, 0), (0, Np - N)))

    kernel = functools.partial(_qlinear_kernel,
                               float(x_quant_min), float(x_quant_max),
                               bool(use_int8_mxu))

    out = pl.pallas_call(
        kernel,
        out_shape=jax.ShapeDtypeStruct((Mp, Np), jnp.float32),
        grid=(Mp // tm, Np // tn, Kp // tk),
        in_specs=[
            pl.BlockSpec(memory_space=pltpu.MemorySpace.SMEM),   # inv_scale (1,)
            pl.BlockSpec(memory_space=pltpu.MemorySpace.SMEM),   # zero point (1,)
            pl.BlockSpec((tm, tk), lambda i, j, k: (i, k)),      # x tile
            pl.BlockSpec((tk, tn), lambda i, j, k: (k, j)),      # w tile
            pl.BlockSpec((1, tn), lambda i, j, k: (0, j)),       # folded scales
            pl.BlockSpec((1, tn), lambda i, j, k: (0, j)),       # folded offsets
        ],
        out_specs=pl.BlockSpec((tm, tn), lambda i, j, k: (i, j)),
        scratch_shapes=[pltpu.VMEM((tm, tn), jnp.int32)],
        compiler_params=pltpu.CompilerParams(
            dimension_semantics=("parallel", "parallel", "arbitrary")),
    )(inv_scale.reshape(1), x_zp.astype(jnp.float32).reshape(1),
      x_p, w_p, scale_p, off_p)

    return out[:M, :N]


# ----------------------------------------------------------------------------
# Pure-JAX reference (same math) for a correctness check.
# ----------------------------------------------------------------------------
def _reference(x, w_int8_t, w_sums, w_scales, bias, qmin=-128, qmax=127):
    eps = jnp.finfo(jnp.float32).eps
    mn = jnp.minimum(jnp.min(x), 0.0)
    mx = jnp.maximum(jnp.max(x), 0.0)
    scale = jnp.maximum((mx - mn) / float(qmax - qmin), eps)
    zp = jnp.clip(float(qmin) - jnp.round(mn / scale), qmin, qmax)
    inv = 1.0 / scale                      # same reciprocal form as the kernel
    xq = jnp.clip(jnp.round(x * inv) + zp, qmin, qmax)
    acc = jnp.dot(xq, w_int8_t.astype(jnp.float32)).astype(jnp.int32)
    y = (acc - zp.astype(jnp.int32) * w_sums[None, :].astype(jnp.int32)).astype(jnp.float32)
    y = y * scale * w_scales[None, :].astype(jnp.float32)
    if bias is not None:
        y = y + bias[None, :]
    return y.astype(jnp.float32)


if __name__ == "__main__":
    # Shapes from the module docstring example: Linear(32, 64), x = [24, 32].
    M, K, N = 24, 32, 64   # note1: in_channels (K) must be > 16 — satisfied.

    key = jax.random.PRNGKey(0)
    kw, kb, kx = jax.random.split(key, 3)

    # Deterministic synthetic float weight -> per-out-channel symmetric int8
    # quantization (mirrors from_float / dynamically_quantize_per_channel, axis=0).
    w_fp = jax.random.normal(kw, (N, K), jnp.float32) * 0.1          # [out, in]
    w_absmax = jnp.max(jnp.abs(w_fp), axis=1, keepdims=True)
    w_scales = jnp.maximum(w_absmax / ((127 - (-128)) / 2.0),
                           jnp.finfo(jnp.float32).eps)               # [N, 1]
    # TODO(synk): torch stores w_scales as float64; kept float32 here (JAX x64 disabled).
    w_int8 = jnp.clip(jnp.round(w_fp / w_scales), -128, 127).astype(jnp.int8)   # [N, K]
    w_int8_t = jnp.transpose(w_int8)                                  # [K, N]
    w_int8_t_sums = jnp.sum(w_int8_t.astype(jnp.int32), axis=0)       # [N]
    w_scales_vec = w_scales.reshape(N)                                # [N]
    bias = jax.random.normal(kb, (N,), jnp.float32) * 0.05            # [N]

    x = jax.random.normal(kx, (M, K), jnp.float32)

    out = dynamically_quantized_linear(x, w_int8_t, w_int8_t_sums, w_scales_vec, bias)
    out = jax.block_until_ready(out)

    ref = jax.block_until_ready(_reference(x, w_int8_t, w_int8_t_sums, w_scales_vec, bias))
    assert out.shape == (M, N) and out.dtype == jnp.float32
    assert np.allclose(np.asarray(out), np.asarray(ref), rtol=1e-3, atol=1e-3), \
        "Pallas output mismatch vs reference"

    print("KERNEL_OK")
</pallas_src>

<mosaic_0001>
module attributes {stable_mosaic.version = 11 : i64} {
  func.func @_qlinear_kernel(%arg0: i32, %arg1: i32, %arg2: i32, %arg3: memref<1xf32, #tpu.memory_space<smem>>, %arg4: memref<1xf32, #tpu.memory_space<smem>>, %arg5: memref<24x128xf32, #tpu.memory_space<vmem>>, %arg6: memref<128x128xi8, #tpu.memory_space<vmem>>, %arg7: memref<1x128xf32, #tpu.memory_space<vmem>>, %arg8: memref<1x128xf32, #tpu.memory_space<vmem>>, %arg9: memref<24x128xf32, #tpu.memory_space<vmem>>, %arg10: memref<24x128xi32, #tpu.memory_space<vmem>>) attributes {dimension_semantics = [#tpu.dimension_semantics<parallel>, #tpu.dimension_semantics<parallel>, #tpu.dimension_semantics<arbitrary>], iteration_bounds = array<i64: 1, 1, 1>, scalar_prefetch = 0 : i64, scratch_operands = 1 : i64, tpu.core_type = #tpu.core_type<tc>, window_params = [{transform_indices = @transform_0, window_bounds = array<i64: 1>}, {transform_indices = @transform_1, window_bounds = array<i64: 1>}, {transform_indices = @transform_2, window_bounds = array<i64: 24, 128>}, {transform_indices = @transform_3, window_bounds = array<i64: 128, 128>}, {transform_indices = @transform_4, window_bounds = array<i64: 1, 128>}, {transform_indices = @transform_5, window_bounds = array<i64: 1, 128>}, {transform_indices = @transform_6, window_bounds = array<i64: 24, 128>}]} {
    %c0_i32 = arith.constant 0 : i32
    %0 = arith.cmpi eq, %arg2, %c0_i32 : i32
    %1 = arith.extui %0 : i1 to i32
    %c0_i32_0 = arith.constant 0 : i32
    %2 = arith.cmpi ne, %1, %c0_i32_0 : i32
    scf.if %2 {
      %c0_i32_14 = arith.constant 0 : i32
      %26 = vector.broadcast %c0_i32_14 : i32 to vector<24x128xi32>
      %c0_15 = arith.constant 0 : index
      %c0_16 = arith.constant 0 : index
      %27 = vector.load %arg10[%c0_15, %c0_16] : memref<24x128xi32, #tpu.memory_space<vmem>>, vector<24x128xi32>
      tpu.vector_store %arg10[%c0_15, %c0_16], %26 {strides = array<i32>} : memref<24x128xi32, #tpu.memory_space<vmem>>, vector<24x128xi32>,
    } else {
    }
    %c0 = arith.constant 0 : index
    %3 = memref.load %arg3[%c0] : memref<1xf32, #tpu.memory_space<smem>>
    %c0_1 = arith.constant 0 : index
    %4 = memref.load %arg4[%c0_1] : memref<1xf32, #tpu.memory_space<smem>>
    %c0_2 = arith.constant 0 : index
    %c0_3 = arith.constant 0 : index
    %5 = vector.load %arg5[%c0_2, %c0_3] : memref<24x128xf32, #tpu.memory_space<vmem>>, vector<24x128xf32>
    %6 = vector.broadcast %3 : f32 to vector<24x128xf32>
    %7 = arith.mulf %5, %6 : vector<24x128xf32>
    %8 = math.roundeven %7 : vector<24x128xf32>
    %9 = vector.broadcast %4 : f32 to vector<24x128xf32>
    %10 = arith.addf %8, %9 : vector<24x128xf32>
    %cst = arith.constant -1.280000e+02 : f32
    %cst_4 = arith.constant 1.270000e+02 : f32
    %11 = vector.broadcast %cst : f32 to vector<24x128xf32>
    %12 = arith.maximumf %11, %10 : vector<24x128xf32>
    %13 = vector.broadcast %cst_4 : f32 to vector<24x128xf32>
    %14 = arith.minimumf %13, %12 : vector<24x128xf32>
    %15 = arith.truncf %14 : vector<24x128xf32> to vector<24x128xbf16>
    %c0_5 = arith.constant 0 : index
    %c0_6 = arith.constant 0 : index
    %16 = vector.load %arg6[%c0_5, %c0_6] : memref<128x128xi8, #tpu.memory_space<vmem>>, vector<128x128xi8>
    %17 = arith.sitofp %16 : vector<128x128xi8> to vector<128x128xbf16>
    %cst_7 = arith.constant dense<0.000000e+00> : vector<24x128xf32>
    %18 = tpu.matmul %15, %17, %cst_7 {dimension_numbers = #tpu.dot_dimension_numbers<[1], [0], [0], [1], [0, 0, 1, 1], [], []>} : vector<24x128xbf16>, vector<128x128xbf16>, vector<24x128xf32> -> vector<24x128xf32>
    %c0_8 = arith.constant 0 : index
    %c0_9 = arith.constant 0 : index
    %19 = vector.load %arg10[%c0_8, %c0_9] : memref<24x128xi32, #tpu.memory_space<vmem>>, vector<24x128xi32>
    %20 = arith.fptosi %18 : vector<24x128xf32> to vector<24x128xi32>
    %21 = arith.addi %19, %20 : vector<24x128xi32>
    %c0_10 = arith.constant 0 : index
    %c0_11 = arith.constant 0 : index
    %22 = vector.load %arg10[%c0_10, %c0_11] : memref<24x128xi32, #tpu.memory_space<vmem>>, vector<24x128xi32>
    tpu.vector_store %arg10[%c0_10, %c0_11], %21 {strides = array<i32>} : memref<24x128xi32, #tpu.memory_space<vmem>>, vector<24x128xi32>,
    %c0_i32_12 = arith.constant 0 : i32
    %23 = arith.cmpi eq, %arg2, %c0_i32_12 : i32
    %24 = arith.extui %23 : i1 to i32
    %c0_i32_13 = arith.constant 0 : i32
    %25 = arith.cmpi ne, %24, %c0_i32_13 : i32
    scf.if %25 {
      %c0_14 = arith.constant 0 : index
      %c0_15 = arith.constant 0 : index
      %26 = vector.load %arg10[%c0_14, %c0_15] : memref<24x128xi32, #tpu.memory_space<vmem>>, vector<24x128xi32>
      %27 = arith.sitofp %26 : vector<24x128xi32> to vector<24x128xf32>
      %c0_16 = arith.constant 0 : index
      %c0_17 = arith.constant 0 : index
      %28 = vector.load %arg7[%c0_16, %c0_17] : memref<1x128xf32, #tpu.memory_space<vmem>>, vector<1x128xf32>
      %29 = vector.broadcast %28 : vector<1x128xf32> to vector<24x128xf32>
      %30 = arith.mulf %27, %29 : vector<24x128xf32>
      %c0_18 = arith.constant 0 : index
      %c0_19 = arith.constant 0 : index
      %31 = vector.load %arg8[%c0_18, %c0_19] : memref<1x128xf32, #tpu.memory_space<vmem>>, vector<1x128xf32>
      %32 = vector.broadcast %31 : vector<1x128xf32> to vector<24x128xf32>
      %33 = arith.addf %30, %32 : vector<24x128xf32>
      %c0_20 = arith.constant 0 : index
      %c0_21 = arith.constant 0 : index
      %34 = vector.load %arg9[%c0_20, %c0_21] : memref<24x128xf32, #tpu.memory_space<vmem>>, vector<24x128xf32>
      tpu.vector_store %arg9[%c0_20, %c0_21], %33 {strides = array<i32>} : memref<24x128xf32, #tpu.memory_space<vmem>>, vector<24x128xf32>,
    } else {
    }
    return
  }
  func.func @transform_0(%arg0: i32, %arg1: i32, %arg2: i32) -> i32 {
    %c0_i32 = arith.constant 0 : i32
    %c0_i32_0 = arith.constant 0 : i32
    return %c0_i32 : i32
  }
  func.func @transform_1(%arg0: i32, %arg1: i32, %arg2: i32) -> i32 {
    %c0_i32 = arith.constant 0 : i32
    %c0_i32_0 = arith.constant 0 : i32
    return %c0_i32 : i32
  }
  func.func @transform_2(%arg0: i32, %arg1: i32, %arg2: i32) -> (i32, i32) {
    %c0_i32 = arith.constant 0 : i32
    return %arg0, %arg2 : i32, i32
  }
  func.func @transform_3(%arg0: i32, %arg1: i32, %arg2: i32) -> (i32, i32) {
    %c0_i32 = arith.constant 0 : i32
    return %arg2, %arg1 : i32, i32
  }
  func.func @transform_4(%arg0: i32, %arg1: i32, %arg2: i32) -> (i32, i32) {
    %c0_i32 = arith.constant 0 : i32
    %c0_i32_0 = arith.constant 0 : i32
    return %c0_i32, %arg1 : i32, i32
  }
  func.func @transform_5(%arg0: i32, %arg1: i32, %arg2: i32) -> (i32, i32) {
    %c0_i32 = arith.constant 0 : i32
    %c0_i32_0 = arith.constant 0 : i32
    return %c0_i32, %arg1 : i32, i32
  }
  func.func @transform_6(%arg0: i32, %arg1: i32, %arg2: i32) -> (i32, i32) {
    %c0_i32 = arith.constant 0 : i32
    return %arg0, %arg1 : i32, i32
  }
}

</mosaic_0001>

<bundles_post_ra>
// kernel: tpu_custom_call.1
= control target key start
LH: loop header
LB: loop body
LE: loop exit
PB: predicated region body
PF: predicated region fallthrough
CT: control target
= control target key end

     0   :  { %13 = vsyncpa [#allocation6], 0  ;;  %s423_s0 = inlined_call_operand.<no memory space> [shape: f32[1], index: 0, kind: input, shape index: {}]   ;;  %s424_s1 = inlined_call_operand.<no memory space> [shape: f32[1], index: 1, kind: input, shape index: {}]   ;;  %s425_s2 = inlined_call_operand.hbm [shape: f32[24,128], index: 2, kind: input, shape index: {}]   ;;  %s426_s3 = inlined_call_operand.hbm [shape: s8[128,128], index: 3, kind: input, shape index: {}]   ;;  %s427_s4 = inlined_call_operand.vmem [shape: f32[1,128], index: 4, kind: input, shape index: {}]   ;;  %s428_s5 = inlined_call_operand.vmem [shape: f32[1,128], index: 5, kind: input, shape index: {}]   ;;  %s429_s6 = inlined_call_operand.hbm [shape: f32[24,128], index: 6, kind: output, shape index: {}]  }
   0x1   :  { %14 = vsyncpa [#allocation9], 0 }
   0x2   :  { %15 = vsyncpa [#allocation7], 0  ;;  %s326_s21 = smov [#allocation5]   ;;  %s254_s25 = scalar_lea.hbm %s425_s2, 384 }
   0x3   :  { %s25_s22 = sshll.u32 %s326_s21, 4  ;;  %p255_p0 = scmp.ne.s32.totalorder %s425_s2, %s254_s25  ;;  %s26_s22 = int_to_ptr.vmem [resolvable:$true] %s25_s22 }
   0x4   :  { %p258_p1 = scmp.lt.u32.totalorder %s254_s25, %s425_s2 }
   0x6   :  { %p260_p2 = pnand %p258_p1, %p255_p0 }
   0x8   :  { %263 = shalt.err (!%p260_p2)
}
   0x9   :  { %s264_s30 = scalar_lea.vmem %s26_s22, 384  ;;  %p269_p4 = scmp.lt.s32.totalorder %s26_s22, %s26_s22 }
   0xa   :  { %p265_p3 = scmp.ne.s32.totalorder %s26_s22, %s264_s30  ;;  %p270_p5 = scmp.lt.s32.totalorder %s264_s30, %s264_s30 }
   0xc   :  { %p271_p6 = por %p270_p5, %p269_p4 }
   0xe   :  { %p272_p7 = pnand %p271_p6, %p265_p3 }
  0x10   :  { %275 = shalt.err (!%p272_p7)
}
  0x11   :  { %s327_s7 = smov 128   ;;  %s328_s8 = smov 8  }
  0x12   :  { %31 = dma.hbm_to_vmem [thread:$0]  %s425_s2, 384, %s26_s22, [#allocation6], %s327_s7, %s327_s7, %s328_s8  }
  0x13   :  { %s329_s11 = smov [#allocation8]   ;;  %s276_s15 = scalar_lea.hbm %s426_s3, 512 }
  0x14   :  { %s37_s12 = sshll.u32 %s329_s11, 4  ;;  %p277_p8 = scmp.ne.s32.totalorder %s426_s3, %s276_s15  ;;  %s38_s12 = int_to_ptr.vmem [resolvable:$true] %s37_s12 }
  0x15   :  { %p280_p9 = scmp.lt.u32.totalorder %s276_s15, %s426_s3 }
  0x17   :  { %p282_p10 = pnand %p280_p9, %p277_p8 }
  0x19   :  { %285 = shalt.err (!%p282_p10)
}
  0x1a   :  { %s286_s20 = scalar_lea.vmem %s38_s12, 512  ;;  %p291_p12 = scmp.lt.s32.totalorder %s38_s12, %s38_s12 }
  0x1b   :  { %p287_p11 = scmp.ne.s32.totalorder %s38_s12, %s286_s20  ;;  %p292_p13 = scmp.lt.s32.totalorder %s286_s20, %s286_s20 }
  0x1d   :  { %p293_p0 = por %p292_p13, %p291_p12 }
  0x1f   :  { %p294_p1 = pnand %p293_p0, %p287_p11 }
  0x21   :  { %297 = shalt.err (!%p294_p1)
}
  0x22   :  { %43 = dma.hbm_to_vmem [thread:$0]  %s426_s3, 512, %s38_s12, [#allocation9], %s327_s7, %s327_s7, %s328_s8  }
  0x23   :  { %320 = dma.done.wait [#allocation6], 384  }
  0x24   :  { %321 = vsyncadd [#allocation6], 4294966912 }
  0x25   :  { %322 = dma.done.wait [#allocation9], 512  }
  0x26   :  { %323 = vsyncadd [#allocation9], 4294966784  ;;  %v86_v0 = vld [vmem:[#allocation8] sm:$0xff]  ;;  %v67_v1 = vstv %s423_s0  ;;  %v64_v4 = vld [vmem:[#allocation5] sm:$0xff]  ;;  %v74_v9 = vstv %s424_s1  ;;  %s330_s27 = smov [#allocation10]  }
  0x27   :  { %v90_v2 = vunpack.c.l.s8.bf16 %v86_v0  ;;  %v91_v3 = vunpack.c.h.s8.bf16 %v86_v0  ;;  %v65_v5 = vld [vmem:[#allocation5 + $0x8] sm:$0xff]  ;;  %v87_v6 = vld [vmem:[#allocation8 + $0x8] sm:$0xff]  ;;  %v68_v7 = vmul.f32 %v67_v1, %v64_v4  ;;  %v66_v15 = vld [vmem:[#allocation5 + $0x10] sm:$0xff]  ;;  %s195_s28 = sshll.u32 %s330_s27, 4  ;;  %s196_s28 = int_to_ptr.vmem [resolvable:$true] %s195_s28 }
  0x28   :  { %v69_v8 = vmul.f32 %v67_v1, %v65_v5  ;;  %v92_v10 = vunpack.c.l.s8.bf16 %v87_v6  ;;  %v93_v16 = vunpack.c.h.s8.bf16 %v87_v6  ;;  %v88_v19 = vld [vmem:[#allocation8 + $0x10] sm:$0xff]  ;;  %v70_v22 = vmul.f32 %v67_v1, %v66_v15  ;;  %v89_v27 = vld [vmem:[#allocation8 + $0x18] sm:$0xff]  ;;  %v208_v41 = vld [vmem:[%s427_s4] ss:$0 sm:$0xff]  ;;  %s298_s4 = scalar_lea.vmem %s196_s28, 384  ;;  %p303_p3 = scmp.lt.s32.totalorder %s196_s28, %s196_s28 }
  0x29   :  { %220 = vmatprep.subr.bf16.mxu0 %v90_v2  ;;  %v240_v11 = vround.rtne.f32 %v68_v7  ;;  %v94_v23 = vunpack.c.l.s8.bf16 %v88_v19  ;;  %v95_v26 = vunpack.c.h.s8.bf16 %v88_v19  ;;  %v96_v29 = vunpack.c.l.s8.bf16 %v89_v27  ;;  %v209_v45 = vld [vmem:[%s428_s5] ss:$0 sm:$0xff]  ;;  %p299_p2 = scmp.ne.s32.totalorder %s196_s28, %s298_s4  ;;  %p304_p4 = scmp.lt.s32.totalorder %s298_s4, %s298_s4 }
  0x2a   :  { %221 = vmatpush3.bf16.msra.mxu0 %v90_v2  ;;  %v241_v12 = vround.rtne.f32 %v69_v8  ;;  %v242_v25 = vround.rtne.f32 %v70_v22  ;;  %v97_v31 = vunpack.c.h.s8.bf16 %v89_v27 }
  0x2b   :  { %222 = vmatprep.subr.bf16.mxu0 %v91_v3  ;;  %v75_v13 = vadd.f32 %v240_v11, %v74_v9  ;;  %p305_p5 = por %p304_p4, %p303_p3 }
  0x2c   :  { %v76_v14 = vadd.f32 %v241_v12, %v74_v9  ;;  %v77_v28 = vadd.f32 %v242_v25, %v74_v9 }
  0x2d   :  { %v78_v17 = vmax.f32 %v75_v13, -128.0  ;;  %p306_p6 = pnand %p305_p5, %p299_p2 }
  0x2e   :  { %223 = vmatpush3.bf16.msra.mxu0 %v91_v3  ;;  %v79_v18 = vmax.f32 %v76_v14, -128.0  ;;  %v80_v30 = vmax.f32 %v77_v28, -128.0 }
  0x2f   :  { %224 = vmatprep.subr.bf16.mxu0 %v92_v10  ;;  %v81_v20 = vmin.f32 %v78_v17, 127.0 }
  0x30   :  { %v82_v21 = vmin.f32 %v79_v18, 127.0  ;;  %v83_v32 = vmin.f32 %v80_v30, 127.0 }
  0x32   :  { %225 = vmatpush3.bf16.msra.mxu0 %v92_v10  ;;  %v84_v24 = vpack.c.bf16 %v82_v21, %v81_v20  ;;  %v85_v33 = vpack.c.bf16 %v83_v32, %v83_v32 }
  0x33   :  { %226 = vmatprep.subr.bf16.mxu0 %v93_v16 }
  0x34   :  { %236 = vmatprep.mubr.bf16.mxu0 %v84_v24 }
  0x36   :  { %227 = vmatpush3.bf16.msra.mxu0 %v93_v16 }
  0x37   :  { %228 = vmatprep.subr.bf16.mxu0 %v94_v23 }
  0x3a   :  { %229 = vmatpush3.bf16.msra.mxu0 %v94_v23 }
  0x3b   :  { %230 = vmatprep.subr.bf16.mxu0 %v95_v26 }
  0x3e   :  { %231 = vmatpush3.bf16.msra.mxu0 %v95_v26 }
  0x3f   :  { %232 = vmatprep.subr.bf16.mxu0 %v96_v29 }
  0x42   :  { %233 = vmatpush3.bf16.msra.mxu0 %v96_v29 }
  0x43   :  { %234 = vmatprep.subr.bf16.mxu0 %v97_v31 }
  0x46   :  { %235 = vmatpush3.bf16.msra.mxu0 %v97_v31 }
  0x49   :  { %237 = vmatmul.mubr.bf16.vlgmr.msra.gmra.mrb[0].mxu0 %v85_v33 }
 0x11c   :  { %v238_v34 = vpop.f32.mrb[0].mxu0 }
 0x11d   :  { %v247_v35 = vtrunc.f32 %v238_v34  ;;  %v132_v36 = vpop.f32.mrb[1].mxu0 }
 0x11e   :  { %v243_v37 = vtrunc.f32 %v132_v36  ;;  %v239_v38 = vpop.f32.mrb[2].mxu0 }
 0x11f   :  { %v248_v39 = vcvt.f32.s32 %v247_v35  ;;  %v135_v40 = vpop.f32.mrb[3].mxu0 }
 0x120   :  { %v244_v42 = vcvt.f32.s32 %v243_v37  ;;  %v245_v43 = vtrunc.f32 %v135_v40 }
 0x121   :  { %v166_v44 = vcvt.s32.f32 %v248_v39 }
 0x122   :  { %v164_v46 = vcvt.s32.f32 %v244_v42  ;;  %v246_v47 = vcvt.f32.s32 %v245_v43 }
 0x123   :  { %v176_v48 = vmul.f32 %v208_v41, %v166_v44 }
 0x124   :  { %v174_v49 = vmul.f32 %v208_v41, %v164_v46  ;;  %v165_v50 = vcvt.s32.f32 %v246_v47 }
 0x125   :  { %v186_v51 = vadd.f32 %v209_v45, %v176_v48 }
 0x126   :  { %v184_v52 = vadd.f32 %v209_v45, %v174_v49  ;;  %v175_v53 = vmul.f32 %v208_v41, %v165_v50 }
 0x127   :  { %189 = vst [vmem:[#allocation10 + $0x10] sm:$0xff] %v186_v51 }
 0x128   :  { %187 = vst [vmem:[#allocation10] sm:$0xff] %v184_v52  ;;  %v185_v54 = vadd.f32 %v209_v45, %v175_v53 }
 0x12a   :  { %188 = vst [vmem:[#allocation10 + $0x8] sm:$0xff] %v185_v54 }
 0x12b   :  { %309 = shalt.err (!%p306_p6)
}
 0x12c   :  { %s310_s30 = scalar_lea.hbm %s429_s6, 384 }
 0x12d   :  { %p311_p7 = scmp.ne.s32.totalorder %s429_s6, %s310_s30  ;;  %p314_p8 = scmp.lt.u32.totalorder %s310_s30, %s429_s6 }
 0x12f   :  { %p316_p9 = pnand %p314_p8, %p311_p7 }
 0x131   :  { %319 = shalt.err (!%p316_p9)
}
 0x132   :  { %201 = dma.vmem_to_hbm [thread:$0]  %s196_s28, 384, %s429_s6, [#allocation7], %s327_s7, %s327_s7, %s328_s8  }
 0x133   :  { %324 = dma.done.wait [#allocation7], 384  }
 0x134   :  { %325 = vsyncadd [#allocation7], 4294966912 }
 0x135   :  { %205 = vsyncpa [#allocation6], 1 }
 0x136   :  { %206 = vsyncpa [#allocation9], 1 }
 0x137   :  { %207 = vsyncpa [#allocation7], 1 }

</bundles_post_ra>
